<compile_context>
chip_gen: v6e
topology: v6e:2x2x1
jax: 0.10.0
libtpu: 0.0.40
codegen_flags: <defaults>
</compile_context>

<pallas_src>
import math

import jax
import jax.numpy as jnp
from jax.experimental import pallas as pl
from jax.experimental.pallas import tpu as pltpu


def _choose_planes_per_block(nc, elems_per_plane, dtype_bytes,
                             vmem_budget_bytes=16 << 20):
    """Largest divisor of nc whose double-buffered footprint fits the budget."""
    per_plane = 2 * elems_per_plane * dtype_bytes  # x2 for double buffering
    max_p = max(1, int(vmem_budget_bytes // max(per_plane, 1)))
    best = 1
    for d in range(1, nc + 1):
        if nc % d == 0 and d <= max_p:
            best = d
    return best


def _make_pad_kernel(P, H, W, H_out, W_out, top, left, bottom, right,
                     scalar_fill=None):
    """Kernel over a (P, H_out, W_out) output block: fill border bands, copy interior once.

    If `scalar_fill` is not None it is baked into the kernel as a splat constant and the
    kernel takes (x_ref, o_ref).  Otherwise the kernel takes (fill_ref, x_ref, o_ref)
    with a (P, 1, 1) per-plane fill block.
    """

    def write_blocks(band_fill, x_ref, o_ref):
        # band_fill(shape) -> array of `shape` holding the fill value(s).
        if top > 0:
            o_ref[:, :top, :] = band_fill((P, top, W_out), o_ref.dtype)
        if bottom > 0:
            o_ref[:, top + H:, :] = band_fill((P, bottom, W_out), o_ref.dtype)
        if left > 0:
            o_ref[:, top:top + H, :left] = band_fill((P, H, left), o_ref.dtype)
        if right > 0:
            o_ref[:, top:top + H, left + W:] = band_fill((P, H, right), o_ref.dtype)
        # Interior written exactly once (no redundant full-plane fill).
        o_ref[:, top:top + H, left:left + W] = x_ref[...]

    if scalar_fill is not None:
        def kernel(x_ref, o_ref):
            write_blocks(lambda shape, dt: jnp.full(shape, scalar_fill, dtype=dt),
                         x_ref, o_ref)
        return kernel

    def kernel(fill_ref, x_ref, o_ref):
        f = fill_ref[...]  # (P, 1, 1), per-plane fill value
        write_blocks(lambda shape, dt: jnp.broadcast_to(f, shape).astype(dt),
                     x_ref, o_ref)
    return kernel


def pad_to_size(image, size, fill=0, *, vmem_budget_bytes=16 << 20):
    """Pallas implementation of PadToSize.forward.

    image: (N, C, H, W) array.
    size:  (target_h, target_w).
    fill:  scalar or length-C tuple of per-channel fill values.
    """
    N, C, H, W = image.shape
    target_h, target_w = size

    pad_h = max(target_h - H, 0)
    pad_w = max(target_w - W, 0)
    left, top = pad_w // 2, pad_h // 2
    right, bottom = math.ceil(pad_w / 2), math.ceil(pad_h / 2)
    H_out = H + top + bottom
    W_out = W + left + right

    # Fast path: nothing to pad -> no kernel launch at all.
    if pad_h == 0 and pad_w == 0:
        return image

    # Collapse degenerate per-channel fills to a scalar (cheaper kernel, no fill input).
    if isinstance(fill, (tuple, list)):
        assert len(fill) == C, "per-channel fill must have length C"
        if len(set(fill)) == 1:
            fill = fill[0]
    scalar_fill = None if isinstance(fill, (tuple, list)) else fill

    # Flatten (N, C) -> one plane axis; pick planes-per-block from the VMEM budget
    # (budgeted against v7x's 32 MiB scoped default, not v6e/v5e's 128 MiB physical).
    NC = N * C
    dtype_bytes = jnp.dtype(image.dtype).itemsize
    elems_per_plane = H * W + H_out * W_out + 1
    P = _choose_planes_per_block(NC, elems_per_plane, dtype_bytes, vmem_budget_bytes)
    grid = (NC // P,)

    x_flat = image.reshape(NC, H, W)

    kernel = _make_pad_kernel(P, H, W, H_out, W_out, top, left, bottom, right,
                              scalar_fill=scalar_fill)

    out_bytes = NC * H_out * W_out * dtype_bytes
    in_bytes = x_flat.size * dtype_bytes

    if scalar_fill is not None:
        # Scalar fill baked into the kernel: no fill input stream at all.
        in_specs = [pl.BlockSpec((P, H, W), lambda p: (p, 0, 0))]
        args = (x_flat,)
    else:
        # Per-channel fill, replicated across the batch to a per-plane (NC, 1, 1) vector.
        fill_c = jnp.asarray(fill, dtype=image.dtype)
        fill_planes = jnp.tile(fill_c, (N,)).reshape(NC, 1, 1)
        in_specs = [
            pl.BlockSpec((P, 1, 1), lambda p: (p, 0, 0)),   # per-plane fill
            pl.BlockSpec((P, H, W), lambda p: (p, 0, 0)),   # input planes
        ]
        args = (fill_planes, x_flat)
        in_bytes += fill_planes.size * dtype_bytes

    cost = pl.CostEstimate(flops=0, transcendentals=0,
                           bytes_accessed=in_bytes + out_bytes)

    out_flat = pl.pallas_call(
        kernel,
        out_shape=jax.ShapeDtypeStruct((NC, H_out, W_out), image.dtype),
        grid=grid,
        in_specs=in_specs,
        out_specs=pl.BlockSpec((P, H_out, W_out), lambda p: (p, 0, 0)),
        compiler_params=pltpu.CompilerParams(
            dimension_semantics=("parallel",),   # shards planes across v7x's two TCs
            vmem_limit_bytes=32 << 20,
        ),
        cost_estimate=cost,
    )(*args)

    return out_flat.reshape(N, C, H_out, W_out)


def _reference_pad(image, size, fill):
    """Pure-JAX reference mirroring TF.pad semantics."""
    N, C, H, W = image.shape
    pad_h = max(size[0] - H, 0)
    pad_w = max(size[1] - W, 0)
    left, top = pad_w // 2, pad_h // 2
    right, bottom = math.ceil(pad_w / 2), math.ceil(pad_h / 2)
    H_out, W_out = H + top + bottom, W + left + right
    if isinstance(fill, (tuple, list)):
        fill_arr = jnp.asarray(fill, dtype=image.dtype).reshape(1, C, 1, 1)
    else:
        fill_arr = jnp.full((1, C, 1, 1), fill, dtype=image.dtype)
    out = jnp.broadcast_to(fill_arr, (N, C, H_out, W_out))
    out = out.at[:, :, top:top + H, left:left + W].set(image)
    return out


if __name__ == "__main__":
    key = jax.random.PRNGKey(0)
    N, C, H, W = 2, 4, 16, 16
    x = jax.random.uniform(key, (N, C, H, W), dtype=jnp.float32) * 255.0

    # 1) Asymmetric pad on both axes, per-channel fill (fill-input kernel path).
    size = (24, 20)
    fill = (1.0, 2.0, 3.0, 4.0)
    out = jax.block_until_ready(pad_to_size(x, size, fill))
    ref = _reference_pad(x, size, fill)
    assert out.shape == ref.shape, (out.shape, ref.shape)
    assert jnp.allclose(out, ref), "mismatch vs reference (both-axis, per-channel fill)"

    # 2) Width-only pad, scalar fill (baked-constant kernel, static band guards).
    out_w = jax.block_until_ready(pad_to_size(x, (16, 32), 0.5))
    ref_w = _reference_pad(x, (16, 32), 0.5)
    assert out_w.shape == ref_w.shape and jnp.allclose(out_w, ref_w), \
        "mismatch vs reference (width-only pad, scalar fill)"

    # 3) Height-only pad, uniform tuple fill collapses to the scalar path.
    out_h = jax.block_until_ready(pad_to_size(x, (20, 16), (7.0, 7.0, 7.0, 7.0)))
    ref_h = _reference_pad(x, (20, 16), (7.0, 7.0, 7.0, 7.0))
    assert out_h.shape == ref_h.shape and jnp.allclose(out_h, ref_h), \
        "mismatch vs reference (height-only pad, uniform tuple fill)"

    # 4) Tiny VMEM budget forces P=1 (multi-step grid) with per-channel fill.
    out_small = jax.block_until_ready(
        pad_to_size(x, size, fill, vmem_budget_bytes=8192))
    assert jnp.allclose(out_small, ref), "mismatch vs reference (P=1 multi-step grid)"

    # 5) No-pad case -> wrapper fast path, returns the input untouched.
    out2 = jax.block_until_ready(pad_to_size(x, (8, 8), 0.0))
    assert out2.shape == x.shape and jnp.allclose(out2, x)

    print("KERNEL_OK")
</pallas_src>

<mosaic_0001>
module attributes {stable_mosaic.version = 11 : i64} {
  func.func @kernel(%arg0: i32, %arg1: memref<8x1x1xf32, #tpu.memory_space<vmem>>, %arg2: memref<8x16x16xf32, #tpu.memory_space<vmem>>, %arg3: memref<8x24x20xf32, #tpu.memory_space<vmem>>) attributes {dimension_semantics = [#tpu.dimension_semantics<parallel>], iteration_bounds = array<i64: 1>, scalar_prefetch = 0 : i64, scratch_operands = 0 : i64, tpu.core_type = #tpu.core_type<tc>, window_params = [{transform_indices = @transform_0, window_bounds = array<i64: 8, 1, 1>}, {transform_indices = @transform_1, window_bounds = array<i64: 8, 16, 16>}, {transform_indices = @transform_2, window_bounds = array<i64: 8, 24, 20>}]} {
    %c0 = arith.constant 0 : index
    %c0_0 = arith.constant 0 : index
    %c0_1 = arith.constant 0 : index
    %0 = vector.load %arg1[%c0, %c0_0, %c0_1] : memref<8x1x1xf32, #tpu.memory_space<vmem>>, vector<8x1x1xf32>
    %1 = vector.shape_cast %0 : vector<8x1x1xf32> to vector<8x1x1xf32>
    %2 = vector.broadcast %1 : vector<8x1x1xf32> to vector<8x4x20xf32>
    %c0_2 = arith.constant 0 : index
    %c0_3 = arith.constant 0 : index
    %c0_4 = arith.constant 0 : index
    %3 = vector.load %arg3[%c0_2, %c0_3, %c0_4] : memref<8x24x20xf32, #tpu.memory_space<vmem>>, vector<8x4x20xf32>
    tpu.vector_store %arg3[%c0_2, %c0_3, %c0_4], %2 {strides = array<i32>} : memref<8x24x20xf32, #tpu.memory_space<vmem>>, vector<8x4x20xf32>,
    %4 = vector.shape_cast %0 : vector<8x1x1xf32> to vector<8x1x1xf32>
    %5 = vector.broadcast %4 : vector<8x1x1xf32> to vector<8x4x20xf32>
    %c0_5 = arith.constant 0 : index
    %c20 = arith.constant 20 : index
    %c0_6 = arith.constant 0 : index
    %6 = vector.load %arg3[%c0_5, %c20, %c0_6] : memref<8x24x20xf32, #tpu.memory_space<vmem>>, vector<8x4x20xf32>
    tpu.vector_store %arg3[%c0_5, %c20, %c0_6], %5 {strides = array<i32>} : memref<8x24x20xf32, #tpu.memory_space<vmem>>, vector<8x4x20xf32>,
    %7 = vector.shape_cast %0 : vector<8x1x1xf32> to vector<8x1x1xf32>
    %8 = vector.broadcast %7 : vector<8x1x1xf32> to vector<8x16x2xf32>
    %c0_7 = arith.constant 0 : index
    %c4 = arith.constant 4 : index
    %c0_8 = arith.constant 0 : index
    %9 = vector.load %arg3[%c0_7, %c4, %c0_8] : memref<8x24x20xf32, #tpu.memory_space<vmem>>, vector<8x16x2xf32>
    tpu.vector_store %arg3[%c0_7, %c4, %c0_8], %8 {strides = array<i32>} : memref<8x24x20xf32, #tpu.memory_space<vmem>>, vector<8x16x2xf32>,
    %10 = vector.shape_cast %0 : vector<8x1x1xf32> to vector<8x1x1xf32>
    %11 = vector.broadcast %10 : vector<8x1x1xf32> to vector<8x16x2xf32>
    %c0_9 = arith.constant 0 : index
    %c4_10 = arith.constant 4 : index
    %c18 = arith.constant 18 : index
    %12 = vector.load %arg3[%c0_9, %c4_10, %c18] : memref<8x24x20xf32, #tpu.memory_space<vmem>>, vector<8x16x2xf32>
    tpu.vector_store %arg3[%c0_9, %c4_10, %c18], %11 {strides = array<i32>} : memref<8x24x20xf32, #tpu.memory_space<vmem>>, vector<8x16x2xf32>,
    %c0_11 = arith.constant 0 : index
    %c0_12 = arith.constant 0 : index
    %c0_13 = arith.constant 0 : index
    %13 = vector.load %arg2[%c0_11, %c0_12, %c0_13] : memref<8x16x16xf32, #tpu.memory_space<vmem>>, vector<8x16x16xf32>
    %c0_14 = arith.constant 0 : index
    %c4_15 = arith.constant 4 : index
    %c2 = arith.constant 2 : index
    %14 = vector.load %arg3[%c0_14, %c4_15, %c2] : memref<8x24x20xf32, #tpu.memory_space<vmem>>, vector<8x16x16xf32>
    tpu.vector_store %arg3[%c0_14, %c4_15, %c2], %13 {strides = array<i32>} : memref<8x24x20xf32, #tpu.memory_space<vmem>>, vector<8x16x16xf32>,
    return
  }
  func.func @transform_0(%arg0: i32) -> (i32, i32, i32) {
    %c0_i32 = arith.constant 0 : i32
    %c0_i32_0 = arith.constant 0 : i32
    %c0_i32_1 = arith.constant 0 : i32
    return %arg0, %c0_i32, %c0_i32_0 : i32, i32, i32
  }
  func.func @transform_1(%arg0: i32) -> (i32, i32, i32) {
    %c0_i32 = arith.constant 0 : i32
    %c0_i32_0 = arith.constant 0 : i32
    %c0_i32_1 = arith.constant 0 : i32
    return %arg0, %c0_i32, %c0_i32_0 : i32, i32, i32
  }
  func.func @transform_2(%arg0: i32) -> (i32, i32, i32) {
    %c0_i32 = arith.constant 0 : i32
    %c0_i32_0 = arith.constant 0 : i32
    %c0_i32_1 = arith.constant 0 : i32
    return %arg0, %c0_i32, %c0_i32_0 : i32, i32, i32
  }
}

</mosaic_0001>

<bundles_post_ra>
// kernel: tpu_custom_call.1
= control target key start
LH: loop header
LB: loop body
LE: loop exit
PB: predicated region body
PF: predicated region fallthrough
CT: control target
= control target key end

     0   :  { %7 = vsyncpa [#allocation3], 0  ;;  %s295_s9 = smov [#allocation2]   ;;  %s598_s0 = inlined_call_operand.vmem [shape: f32[8,1,1], index: 0, kind: input, shape index: {}]   ;;  %s599_s1 = inlined_call_operand.hbm [shape: f32[8,16,16], index: 1, kind: input, shape index: {}]   ;;  %s600_s2 = inlined_call_operand.vmem [shape: f32[8,24,20], index: 2, kind: output, shape index: {}]  }
   0x1   :  { %s15_s10 = sshll.u32 %s295_s9, 4  ;;  %s16_s10 = int_to_ptr.vmem [resolvable:$true] %s15_s10 }
   0x2   :  { %s281_s11 = scalar_lea.vmem %s16_s10, 2048  ;;  %p286_p1 = scmp.lt.s32.totalorder %s16_s10, %s16_s10 }
   0x3   :  { %p282_p0 = scmp.ne.s32.totalorder %s16_s10, %s281_s11  ;;  %p287_p2 = scmp.lt.s32.totalorder %s281_s11, %s281_s11 }
   0x5   :  { %p288_p3 = por %p287_p2, %p286_p1 }
   0x7   :  { %p289_p4 = pnand %p288_p3, %p282_p0 }
   0x9   :  { %292 = shalt.err (!%p289_p4)
}
   0xa   :  { %s296_s12 = smov 128   ;;  %s297_s13 = smov 8  }
   0xb   :  { %21 = dma.hbm_to_vmem [thread:$0]  %s599_s1, 2048, %s16_s10, [#allocation3], %s296_s12, %s296_s12, %s297_s13  }
   0xc   :  { %293 = dma.done.wait [#allocation3], 2048  }
   0xd   :  { %294 = vsyncadd [#allocation3], 4294965248  ;;  %v298_v0 = vmov 0   ;;  %v260_v1 = vld [vmem:[%s598_s0 + $0x2] ss:$0 sm:$0xff]  ;;  %v157_v9 = vld [vmem:[#allocation2 + $0x8] sm:$0xff] }
   0xe   :  { %272 = vset.pattern.permute.xlu1 %v298_v0  ;;  %271 = vset.pattern.permute.xlu0 %v298_v0  ;;  %v258_v2 = vld [vmem:[%s598_s0] ss:$0 sm:$0xff]  ;;  %v261_v3 = vld [vmem:[%s598_s0 + $0x3] ss:$0 sm:$0xff]  ;;  %v259_v4 = vld [vmem:[%s598_s0 + $0x1] ss:$0 sm:$0xff] }
   0xf   :  { %82 = vperm.xlu1 %272, %v260_v1   ;;  %74 = vperm.xlu0 %271, %v258_v2   ;;  %v263_v5 = vld [vmem:[%s598_s0 + $0x5] ss:$0 sm:$0xff]  ;;  %v262_v6 = vld [vmem:[%s598_s0 + $0x4] ss:$0 sm:$0xff]  ;;  %v265_v7 = vld [vmem:[%s598_s0 + $0x7] ss:$0 sm:$0xff] }
  0x10   :  { %v264_v8 = vld [vmem:[%s598_s0 + $0x6] ss:$0 sm:$0xff]  ;;  %s299_s3 = smov 2   ;;  %v159_v11 = vld [vmem:[#allocation2 + $0x18] sm:$0xff]  ;;  %v158_v12 = vld [vmem:[#allocation2 + $0x10] sm:$0xff]  ;;  %vm105_vm0 = vcmask 158720  }
  0x11   :  { %v156_v10 = vld [vmem:[#allocation2] sm:$0xff]  ;;  %v161_v13 = vld [vmem:[#allocation2 + $0x28] sm:$0xff]  ;;  %v163_v15 = vld [vmem:[#allocation2 + $0x38] sm:$0xff]  ;;  %vm122_vm1 = vcmask 15360   ;;  %vm139_vm2 = vcmask 162960   ;;  %vm236_vm3 = vcmask 146448  }
  0x12   :  { %v160_v14 = vld [vmem:[#allocation2 + $0x20] sm:$0xff]  ;;  %v162_v16 = vld [vmem:[#allocation2 + $0x30] sm:$0xff]  ;;  %v165_v17 = vld [vmem:[#allocation2 + $0x48] sm:$0xff] }
  0x13   :  { %86 = vperm.xlu1 %272, %v261_v3   ;;  %78 = vperm.xlu0 %271, %v259_v4   ;;  %v164_v18 = vld [vmem:[#allocation2 + $0x40] sm:$0xff]  ;;  %v167_v19 = vld [vmem:[#allocation2 + $0x58] sm:$0xff]  ;;  %v166_v20 = vld [vmem:[#allocation2 + $0x50] sm:$0xff] }
  0x14   :  { %v169_v21 = vld [vmem:[#allocation2 + $0x68] sm:$0xff]  ;;  %v168_v22 = vld [vmem:[#allocation2 + $0x60] sm:$0xff]  ;;  %v171_v23 = vld [vmem:[#allocation2 + $0x78] sm:$0xff] }
  0x15   :  { %v170_v24 = vld [vmem:[#allocation2 + $0x70] sm:$0xff] }
  0x17   :  { %94 = vperm.xlu1 %272, %v263_v5   ;;  %90 = vperm.xlu0 %271, %v262_v6  }
  0x1b   :  { %102 = vperm.xlu1 %272, %v265_v7   ;;  %98 = vperm.xlu0 %271, %v264_v8  }
  0x1f   :  { %190 = vrot.lane.b32.xlu1 %v157_v9, %s299_s3  ;;  %188 = vrot.lane.b32.xlu0 %v156_v10, %s299_s3 }
  0x23   :  { %194 = vrot.lane.b32.xlu1 %v159_v11, %s299_s3  ;;  %192 = vrot.lane.b32.xlu0 %v158_v12, %s299_s3 }
  0x27   :  { %198 = vrot.lane.b32.xlu1 %v161_v13, %s299_s3  ;;  %196 = vrot.lane.b32.xlu0 %v160_v14, %s299_s3 }
  0x2b   :  { %202 = vrot.lane.b32.xlu1 %v163_v15, %s299_s3  ;;  %200 = vrot.lane.b32.xlu0 %v162_v16, %s299_s3 }
  0x2f   :  { %206 = vrot.lane.b32.xlu1 %v165_v17, %s299_s3  ;;  %204 = vrot.lane.b32.xlu0 %v164_v18, %s299_s3 }
  0x33   :  { %210 = vrot.lane.b32.xlu1 %v167_v19, %s299_s3  ;;  %208 = vrot.lane.b32.xlu0 %v166_v20, %s299_s3 }
  0x37   :  { %214 = vrot.lane.b32.xlu1 %v169_v21, %s299_s3  ;;  %212 = vrot.lane.b32.xlu0 %v168_v22, %s299_s3 }
  0x3b   :  { %218 = vrot.lane.b32.xlu1 %v171_v23, %s299_s3  ;;  %216 = vrot.lane.b32.xlu0 %v170_v24, %s299_s3 }
  0x8a   :  { %v83_v25 = vpop.permute.xlu1 %82  ;;  %v75_v26 = vpop.permute.xlu0 %74 }
  0x8b   :  { %108 = vst.msk [vmem:[%s600_s2 + $0x30] sm:$0xf] %vm105_vm0, %v83_v25  ;;  %116 = vst.msk [vmem:[%s600_s2 + $0x44] sm:$0xf] %vm105_vm0, %v83_v25 }
  0x8c   :  { %106 = vst.msk [vmem:[%s600_s2] sm:$0xf] %vm105_vm0, %v75_v26  ;;  %114 = vst.msk [vmem:[%s600_s2 + $0x14] sm:$0xf] %vm105_vm0, %v75_v26 }
  0x8d   :  { %124 = vst.msk [vmem:[%s600_s2 + $0xc] sm:$0xff] %vm122_vm1, %v75_v26  ;;  %123 = vst.msk [vmem:[%s600_s2 + $0x4] sm:$0xff] %vm122_vm1, %v75_v26 }
  0x8e   :  { %127 = vst.msk [vmem:[%s600_s2 + $0x34] sm:$0xff] %vm122_vm1, %v83_v25  ;;  %128 = vst.msk [vmem:[%s600_s2 + $0x3c] sm:$0xff] %vm122_vm1, %v83_v25  ;;  %v87_v27 = vpop.permute.xlu1 %86  ;;  %v79_v28 = vpop.permute.xlu0 %78 }
  0x8f   :  { %141 = vst.msk [vmem:[%s600_s2 + $0xc] sm:$0xff] %vm139_vm2, %v75_v26  ;;  %140 = vst.msk [vmem:[%s600_s2 + $0x4] sm:$0xff] %vm139_vm2, %v75_v26 }
  0x90   :  { %144 = vst.msk [vmem:[%s600_s2 + $0x34] sm:$0xff] %vm139_vm2, %v83_v25  ;;  %145 = vst.msk [vmem:[%s600_s2 + $0x3c] sm:$0xff] %vm139_vm2, %v83_v25 }
  0x91   :  { %109 = vst.msk [vmem:[%s600_s2 + $0x48] sm:$0xf] %vm105_vm0, %v87_v27  ;;  %117 = vst.msk [vmem:[%s600_s2 + $0x5c] sm:$0xf] %vm105_vm0, %v87_v27 }
  0x92   :  { %107 = vst.msk [vmem:[%s600_s2 + $0x18] sm:$0xf] %vm105_vm0, %v79_v28  ;;  %115 = vst.msk [vmem:[%s600_s2 + $0x2c] sm:$0xf] %vm105_vm0, %v79_v28  ;;  %v95_v29 = vpop.permute.xlu1 %94  ;;  %v91_v30 = vpop.permute.xlu0 %90 }
  0x93   :  { %125 = vst.msk [vmem:[%s600_s2 + $0x1c] sm:$0xff] %vm122_vm1, %v79_v28  ;;  %126 = vst.msk [vmem:[%s600_s2 + $0x24] sm:$0xff] %vm122_vm1, %v79_v28 }
  0x94   :  { %129 = vst.msk [vmem:[%s600_s2 + $0x4c] sm:$0xff] %vm122_vm1, %v87_v27  ;;  %130 = vst.msk [vmem:[%s600_s2 + $0x54] sm:$0xff] %vm122_vm1, %v87_v27 }
  0x95   :  { %142 = vst.msk [vmem:[%s600_s2 + $0x1c] sm:$0xff] %vm139_vm2, %v79_v28  ;;  %143 = vst.msk [vmem:[%s600_s2 + $0x24] sm:$0xff] %vm139_vm2, %v79_v28 }
  0x96   :  { %146 = vst.msk [vmem:[%s600_s2 + $0x4c] sm:$0xff] %vm139_vm2, %v87_v27  ;;  %147 = vst.msk [vmem:[%s600_s2 + $0x54] sm:$0xff] %vm139_vm2, %v87_v27  ;;  %v103_v31 = vpop.permute.xlu1 %102  ;;  %v99_v32 = vpop.permute.xlu0 %98 }
  0x97   :  { %111 = vst.msk [vmem:[%s600_s2 + $0x78] sm:$0xf] %vm105_vm0, %v95_v29  ;;  %119 = vst.msk [vmem:[%s600_s2 + $0x8c] sm:$0xf] %vm105_vm0, %v95_v29 }
  0x98   :  { %110 = vst.msk [vmem:[%s600_s2 + $0x60] sm:$0xf] %vm105_vm0, %v91_v30  ;;  %118 = vst.msk [vmem:[%s600_s2 + $0x74] sm:$0xf] %vm105_vm0, %v91_v30 }
  0x99   :  { %131 = vst.msk [vmem:[%s600_s2 + $0x64] sm:$0xff] %vm122_vm1, %v91_v30  ;;  %132 = vst.msk [vmem:[%s600_s2 + $0x6c] sm:$0xff] %vm122_vm1, %v91_v30 }
  0x9a   :  { %133 = vst.msk [vmem:[%s600_s2 + $0x7c] sm:$0xff] %vm122_vm1, %v95_v29  ;;  %134 = vst.msk [vmem:[%s600_s2 + $0x84] sm:$0xff] %vm122_vm1, %v95_v29  ;;  %v191_v33 = vpop.permute.xlu1 %190  ;;  %v189_v34 = vpop.permute.xlu0 %188 }
  0x9b   :  { %148 = vst.msk [vmem:[%s600_s2 + $0x64] sm:$0xff] %vm139_vm2, %v91_v30  ;;  %149 = vst.msk [vmem:[%s600_s2 + $0x6c] sm:$0xff] %vm139_vm2, %v91_v30 }
  0x9c   :  { %150 = vst.msk [vmem:[%s600_s2 + $0x7c] sm:$0xff] %vm139_vm2, %v95_v29  ;;  %151 = vst.msk [vmem:[%s600_s2 + $0x84] sm:$0xff] %vm139_vm2, %v95_v29 }
  0x9d   :  { %113 = vst.msk [vmem:[%s600_s2 + $0xa8] sm:$0xf] %vm105_vm0, %v103_v31  ;;  %121 = vst.msk [vmem:[%s600_s2 + $0xbc] sm:$0xf] %vm105_vm0, %v103_v31 }
  0x9e   :  { %112 = vst.msk [vmem:[%s600_s2 + $0x90] sm:$0xf] %vm105_vm0, %v99_v32  ;;  %120 = vst.msk [vmem:[%s600_s2 + $0xa4] sm:$0xf] %vm105_vm0, %v99_v32  ;;  %v195_v35 = vpop.permute.xlu1 %194  ;;  %v193_v36 = vpop.permute.xlu0 %192 }
  0x9f   :  { %135 = vst.msk [vmem:[%s600_s2 + $0x94] sm:$0xff] %vm122_vm1, %v99_v32  ;;  %136 = vst.msk [vmem:[%s600_s2 + $0x9c] sm:$0xff] %vm122_vm1, %v99_v32 }
  0xa0   :  { %137 = vst.msk [vmem:[%s600_s2 + $0xac] sm:$0xff] %vm122_vm1, %v103_v31  ;;  %138 = vst.msk [vmem:[%s600_s2 + $0xb4] sm:$0xff] %vm122_vm1, %v103_v31 }
  0xa1   :  { %152 = vst.msk [vmem:[%s600_s2 + $0x94] sm:$0xff] %vm139_vm2, %v99_v32  ;;  %153 = vst.msk [vmem:[%s600_s2 + $0x9c] sm:$0xff] %vm139_vm2, %v99_v32 }
  0xa2   :  { %154 = vst.msk [vmem:[%s600_s2 + $0xac] sm:$0xff] %vm139_vm2, %v103_v31  ;;  %155 = vst.msk [vmem:[%s600_s2 + $0xb4] sm:$0xff] %vm139_vm2, %v103_v31  ;;  %v199_v37 = vpop.permute.xlu1 %198  ;;  %v197_v38 = vpop.permute.xlu0 %196 }
  0xa3   :  { %238 = vst.msk [vmem:[%s600_s2 + $0xc] sm:$0xff] %vm236_vm3, %v191_v33  ;;  %237 = vst.msk [vmem:[%s600_s2 + $0x4] sm:$0xff] %vm236_vm3, %v189_v34 }
  0xa4   :  { %240 = vst.msk [vmem:[%s600_s2 + $0x24] sm:$0xff] %vm236_vm3, %v195_v35  ;;  %239 = vst.msk [vmem:[%s600_s2 + $0x1c] sm:$0xff] %vm236_vm3, %v193_v36 }
  0xa5   :  { %242 = vst.msk [vmem:[%s600_s2 + $0x3c] sm:$0xff] %vm236_vm3, %v199_v37  ;;  %241 = vst.msk [vmem:[%s600_s2 + $0x34] sm:$0xff] %vm236_vm3, %v197_v38 }
  0xa6   :  { %v203_v39 = vpop.permute.xlu1 %202  ;;  %v201_v40 = vpop.permute.xlu0 %200 }
  0xa7   :  { %244 = vst.msk [vmem:[%s600_s2 + $0x54] sm:$0xff] %vm236_vm3, %v203_v39  ;;  %243 = vst.msk [vmem:[%s600_s2 + $0x4c] sm:$0xff] %vm236_vm3, %v201_v40 }
  0xaa   :  { %v207_v41 = vpop.permute.xlu1 %206  ;;  %v205_v42 = vpop.permute.xlu0 %204 }
  0xab   :  { %246 = vst.msk [vmem:[%s600_s2 + $0x6c] sm:$0xff] %vm236_vm3, %v207_v41  ;;  %245 = vst.msk [vmem:[%s600_s2 + $0x64] sm:$0xff] %vm236_vm3, %v205_v42 }
  0xae   :  { %v211_v43 = vpop.permute.xlu1 %210  ;;  %v209_v44 = vpop.permute.xlu0 %208 }
  0xaf   :  { %248 = vst.msk [vmem:[%s600_s2 + $0x84] sm:$0xff] %vm236_vm3, %v211_v43  ;;  %247 = vst.msk [vmem:[%s600_s2 + $0x7c] sm:$0xff] %vm236_vm3, %v209_v44 }
  0xb2   :  { %v215_v45 = vpop.permute.xlu1 %214  ;;  %v213_v46 = vpop.permute.xlu0 %212 }
  0xb3   :  { %250 = vst.msk [vmem:[%s600_s2 + $0x9c] sm:$0xff] %vm236_vm3, %v215_v45  ;;  %249 = vst.msk [vmem:[%s600_s2 + $0x94] sm:$0xff] %vm236_vm3, %v213_v46 }
  0xb6   :  { %v219_v47 = vpop.permute.xlu1 %218  ;;  %v217_v48 = vpop.permute.xlu0 %216 }
  0xb7   :  { %252 = vst.msk [vmem:[%s600_s2 + $0xb4] sm:$0xff] %vm236_vm3, %v219_v47  ;;  %251 = vst.msk [vmem:[%s600_s2 + $0xac] sm:$0xff] %vm236_vm3, %v217_v48 }
  0xb8   :  { %257 = vsyncpa [#allocation3], 1 }

</bundles_post_ra>
